<compile_context>
chip_gen: v7x
topology: tpu7x:2x2x1
jax: 0.10.0
libtpu: 0.0.40
codegen_flags: <defaults>
</compile_context>

<pallas_src>
import jax
import jax.numpy as jnp
from jax.experimental import pallas as pl
from jax.experimental.pallas import tpu as pltpu


def _make_nll_kernel(n_total, tile_n, num_classes):
    """Builds the tiled weighted-NLL kernel (n_total, tile_n, C are static)."""
    needs_row_mask = (n_total % tile_n) != 0

    def kernel(pred_ref, target_ref, weight_ref, out_ref, num_acc, den_acc):
        i = pl.program_id(0)
        nsteps = pl.num_programs(0)

        @pl.when(i == 0)
        def _init():
            num_acc[...] = jnp.zeros_like(num_acc)
            den_acc[...] = jnp.zeros_like(den_acc)

        pred = pred_ref[...].astype(jnp.float32)   # (tile_n, C), f32 accumulation
        tgt = target_ref[...]                      # (tile_n, 1) int32

        # one-hot(target) via lane iota over the class axis
        class_ids = jax.lax.broadcasted_iota(jnp.int32, (tile_n, num_classes), 1)
        sel = class_ids == tgt                     # (tile_n, C) bool

        if needs_row_mask:
            # Mask rows of the (possibly garbage-filled) padded last block.
            row_ids = jax.lax.broadcasted_iota(jnp.int32, (tile_n, 1), 0)
            valid = (i * tile_n + row_ids) < n_total
            sel = jnp.logical_and(sel, valid)

        # where(..., 0) guards against NaN/Inf garbage in padded rows.
        picked = jnp.where(sel, pred, 0.0)                               # (tile_n, C)
        # Sublane (axis-0) reductions only inside the loop; keep lane axis.
        num_acc[...] += jnp.sum(picked, axis=0, keepdims=True)           # (1, C)
        den_acc[...] += jnp.sum(sel.astype(jnp.float32), axis=0, keepdims=True)

        @pl.when(i == nsteps - 1)
        def _finalize():
            # Per-class weights factor out of the row sums: apply them once here.
            w = weight_ref[...].astype(jnp.float32)                      # (1, C)
            numer = jnp.sum(num_acc[...] * w)
            denom = jnp.sum(den_acc[...] * w)
            out_ref[0, 0] = -numer / denom

    return kernel


def get_loss(pred, target, trans_feat, weight, *, max_tile_n=4096):
    """Pallas equivalent of the PyTorch get_loss.forward.

    pred:       (N, C) float (log-probabilities), any float dtype (bf16/f32)
    target:     (N,)   integer class indices
    trans_feat: unused (kept for interface parity with the PyTorch module)
    weight:     (C,)   per-class weights
    """
    del trans_feat  # unused in the reference module as well
    n, c = pred.shape

    target2d = target.astype(jnp.int32).reshape(n, 1)
    weight2d = weight.astype(jnp.float32).reshape(1, c)

    # Tile the N axis; full-array block when it already fits comfortably.
    # When tiling, keep tile_n a multiple of 8 (sublane alignment).
    if n <= max_tile_n:
        tile_n = n
    else:
        tile_n = (max_tile_n // 8) * 8
    grid = (pl.cdiv(n, tile_n),)

    kernel = _make_nll_kernel(n, tile_n, c)

    bytes_accessed = int(pred.size) * pred.dtype.itemsize + n * 4 + c * 4 + 4
    cost = pl.CostEstimate(flops=5 * n * c, transcendentals=0,
                           bytes_accessed=bytes_accessed)

    loss = pl.pallas_call(
        kernel,
        out_shape=jax.ShapeDtypeStruct((1, 1), jnp.float32),
        grid_spec=pltpu.PrefetchScalarGridSpec(
            num_scalar_prefetch=0,
            grid=grid,
            in_specs=[
                pl.BlockSpec((tile_n, c), lambda i: (i, 0)),   # pred tile (streamed)
                pl.BlockSpec((tile_n, 1), lambda i: (i, 0)),   # target tile
                pl.BlockSpec((1, c), lambda i: (0, 0)),        # weight (resident)
            ],
            out_specs=pl.BlockSpec(memory_space=pltpu.SMEM),   # scalar loss
            scratch_shapes=[
                pltpu.VMEM((1, c), jnp.float32),               # per-class sum of picked pred
                pltpu.VMEM((1, c), jnp.float32),               # per-class selected-row count
            ],
        ),
        compiler_params=pltpu.CompilerParams(
            # Sequential accumulation over the N axis (resident accumulators).
            # TODO(synk): on v7x, shard N across the two TensorCores with
            # per-core partial outputs + a tiny JAX reduce instead of a single
            # resident accumulator.
            dimension_semantics=("arbitrary",),
        ),
        cost_estimate=cost,
    )(pred, target2d, weight2d)

    return loss[0, 0]


def _nll_loss_ref(pred, target, weight):
    # pure-JAX reference (matches torch.nn.functional.nll_loss, weighted mean)
    w_t = weight[target]
    picked = jnp.take_along_axis(pred.astype(jnp.float32), target[:, None], axis=1)[:, 0]
    return -jnp.sum(w_t * picked) / jnp.sum(w_t)


if __name__ == "__main__":
    key = jax.random.PRNGKey(0)
    k1, k2, k3, k4, k5, k6 = jax.random.split(key, 6)

    # --- main test: shapes implied by the segmentation module (B, Npts) -> N rows
    B, NPTS, C = 2, 16, 8
    N = B * NPTS

    logits = jax.random.normal(k1, (N, C), dtype=jnp.float32)
    pred = jax.nn.log_softmax(logits, axis=-1)                 # log-probabilities
    target = jax.random.randint(k2, (N,), 0, C, dtype=jnp.int32)
    trans_feat = jax.random.normal(k3, (B, 64, 64), dtype=jnp.float32)  # unused
    weight = jax.random.uniform(k4, (C,), dtype=jnp.float32, minval=0.5, maxval=1.5)

    loss = get_loss(pred, target, trans_feat, weight)
    loss = jax.block_until_ready(loss)
    ref = _nll_loss_ref(pred, target, weight)
    assert jnp.allclose(loss, ref, rtol=1e-5, atol=1e-5), (loss, ref)

    # --- second test: exercises the multi-tile grid path + last-tile row masking
    N2, C2 = 40, 8
    logits2 = jax.random.normal(k5, (N2, C2), dtype=jnp.float32)
    pred2 = jax.nn.log_softmax(logits2, axis=-1)
    target2 = jax.random.randint(k6, (N2,), 0, C2, dtype=jnp.int32)
    weight2 = jnp.linspace(0.5, 1.5, C2, dtype=jnp.float32)

    loss2 = get_loss(pred2, target2, trans_feat, weight2, max_tile_n=16)
    loss2 = jax.block_until_ready(loss2)
    ref2 = _nll_loss_ref(pred2, target2, weight2)
    assert jnp.allclose(loss2, ref2, rtol=1e-5, atol=1e-5), (loss2, ref2)

    # --- third test: bf16 pred streamed in native dtype, f32 accumulation
    pred3 = pred.astype(jnp.bfloat16)
    loss3 = jax.block_until_ready(get_loss(pred3, target, trans_feat, weight))
    ref3 = _nll_loss_ref(pred3, target, weight)
    assert jnp.allclose(loss3, ref3, rtol=2e-2, atol=2e-2), (loss3, ref3)

    print("KERNEL_OK")
</pallas_src>

<mosaic_0001>
module attributes {stable_mosaic.version = 11 : i64} {
  func.func @kernel(%arg0: i32, %arg1: memref<32x8xf32, #tpu.memory_space<vmem>>, %arg2: memref<32x1xi32, #tpu.memory_space<vmem>>, %arg3: memref<1x8xf32, #tpu.memory_space<vmem>>, %arg4: memref<1x1xf32, #tpu.memory_space<smem>>, %arg5: memref<1x8xf32, #tpu.memory_space<vmem>>, %arg6: memref<1x8xf32, #tpu.memory_space<vmem>>) attributes {dimension_semantics = [#tpu.dimension_semantics<arbitrary>], iteration_bounds = array<i64: 1>, scalar_prefetch = 0 : i64, scratch_operands = 2 : i64, tpu.core_type = #tpu.core_type<tc>, window_params = [{transform_indices = @transform_0, window_bounds = array<i64: 32, 8>}, {transform_indices = @transform_1, window_bounds = array<i64: 32, 1>}, {pipeline_mode = #tpu.pipeline_mode<synchronous>, transform_indices = @transform_2, window_bounds = array<i64: 1, 8>}, {transform_indices = @transform_3, window_bounds = array<i64: 1, 1>}]} {
    %c0_i32 = arith.constant 0 : i32
    %0 = arith.cmpi eq, %arg0, %c0_i32 : i32
    %1 = arith.extui %0 : i1 to i32
    %c0_i32_0 = arith.constant 0 : i32
    %2 = arith.cmpi ne, %1, %c0_i32_0 : i32
    scf.if %2 {
      %cst_16 = arith.constant 0.000000e+00 : f32
      %25 = vector.broadcast %cst_16 : f32 to vector<1x8xf32>
      %c0_17 = arith.constant 0 : index
      %c0_18 = arith.constant 0 : index
      %26 = vector.load %arg5[%c0_17, %c0_18] : memref<1x8xf32, #tpu.memory_space<vmem>>, vector<1x8xf32>
      tpu.vector_store %arg5[%c0_17, %c0_18], %25 {strides = array<i32>} : memref<1x8xf32, #tpu.memory_space<vmem>>, vector<1x8xf32>,
      %cst_19 = arith.constant 0.000000e+00 : f32
      %27 = vector.broadcast %cst_19 : f32 to vector<1x8xf32>
      %c0_20 = arith.constant 0 : index
      %c0_21 = arith.constant 0 : index
      %28 = vector.load %arg6[%c0_20, %c0_21] : memref<1x8xf32, #tpu.memory_space<vmem>>, vector<1x8xf32>
      tpu.vector_store %arg6[%c0_20, %c0_21], %27 {strides = array<i32>} : memref<1x8xf32, #tpu.memory_space<vmem>>, vector<1x8xf32>,
    } else {
    }
    %c0 = arith.constant 0 : index
    %c0_1 = arith.constant 0 : index
    %3 = vector.load %arg1[%c0, %c0_1] : memref<32x8xf32, #tpu.memory_space<vmem>>, vector<32x8xf32>
    %c0_2 = arith.constant 0 : index
    %c0_3 = arith.constant 0 : index
    %4 = vector.load %arg2[%c0_2, %c0_3] : memref<32x1xi32, #tpu.memory_space<vmem>>, vector<32x1xi32>
    %5 = tpu.iota {dimensions = array<i32: 1>} : vector<32x8xi32>
    %6 = vector.broadcast %4 : vector<32x1xi32> to vector<32x8xi32>
    %7 = arith.cmpi eq, %5, %6 : vector<32x8xi32>
    %cst = arith.constant 0.000000e+00 : f32
    %8 = vector.broadcast %cst : f32 to vector<32x8xf32>
    %9 = arith.select %7, %3, %8 : vector<32x8xi1>, vector<32x8xf32>
    %c0_4 = arith.constant 0 : index
    %c0_5 = arith.constant 0 : index
    %10 = vector.load %arg5[%c0_4, %c0_5] : memref<1x8xf32, #tpu.memory_space<vmem>>, vector<1x8xf32>
    %cst_6 = arith.constant dense<0.000000e+00> : vector<8xf32>
    %11 = vector.multi_reduction <add>, %9, %cst_6 [0] : vector<32x8xf32> to vector<8xf32>
    %12 = vector.shape_cast %11 : vector<8xf32> to vector<1x8xf32>
    %13 = arith.addf %10, %12 : vector<1x8xf32>
    %c0_7 = arith.constant 0 : index
    %c0_8 = arith.constant 0 : index
    %14 = vector.load %arg5[%c0_7, %c0_8] : memref<1x8xf32, #tpu.memory_space<vmem>>, vector<1x8xf32>
    tpu.vector_store %arg5[%c0_7, %c0_8], %13 {strides = array<i32>} : memref<1x8xf32, #tpu.memory_space<vmem>>, vector<1x8xf32>,
    %c0_9 = arith.constant 0 : index
    %c0_10 = arith.constant 0 : index
    %15 = vector.load %arg6[%c0_9, %c0_10] : memref<1x8xf32, #tpu.memory_space<vmem>>, vector<1x8xf32>
    %16 = arith.extui %7 : vector<32x8xi1> to vector<32x8xi32>
    %17 = arith.sitofp %16 : vector<32x8xi32> to vector<32x8xf32>
    %cst_11 = arith.constant dense<0.000000e+00> : vector<8xf32>
    %18 = vector.multi_reduction <add>, %17, %cst_11 [0] : vector<32x8xf32> to vector<8xf32>
    %19 = vector.shape_cast %18 : vector<8xf32> to vector<1x8xf32>
    %20 = arith.addf %15, %19 : vector<1x8xf32>
    %c0_12 = arith.constant 0 : index
    %c0_13 = arith.constant 0 : index
    %21 = vector.load %arg6[%c0_12, %c0_13] : memref<1x8xf32, #tpu.memory_space<vmem>>, vector<1x8xf32>
    tpu.vector_store %arg6[%c0_12, %c0_13], %20 {strides = array<i32>} : memref<1x8xf32, #tpu.memory_space<vmem>>, vector<1x8xf32>,
    %c0_i32_14 = arith.constant 0 : i32
    %22 = arith.cmpi eq, %arg0, %c0_i32_14 : i32
    %23 = arith.extui %22 : i1 to i32
    %c0_i32_15 = arith.constant 0 : i32
    %24 = arith.cmpi ne, %23, %c0_i32_15 : i32
    scf.if %24 {
      %c0_16 = arith.constant 0 : index
      %c0_17 = arith.constant 0 : index
      %25 = vector.load %arg3[%c0_16, %c0_17] : memref<1x8xf32, #tpu.memory_space<vmem>>, vector<1x8xf32>
      %c0_18 = arith.constant 0 : index
      %c0_19 = arith.constant 0 : index
      %26 = vector.load %arg5[%c0_18, %c0_19] : memref<1x8xf32, #tpu.memory_space<vmem>>, vector<1x8xf32>
      %27 = arith.mulf %26, %25 : vector<1x8xf32>
      %28 = vector.shape_cast %27 : vector<1x8xf32> to vector<1x1x8xf32>
      %cst_20 = arith.constant dense<0.000000e+00> : vector<1xf32>
      %29 = vector.multi_reduction <add>, %28, %cst_20 [1, 2] : vector<1x1x8xf32> to vector<1xf32>
      %30 = vector.shape_cast %29 : vector<1xf32> to vector<1x1x1xf32>
      %31 = vector.extract %30[0, 0, 0] : f32 from vector<1x1x1xf32>
      %c0_21 = arith.constant 0 : index
      %c0_22 = arith.constant 0 : index
      %32 = vector.load %arg6[%c0_21, %c0_22] : memref<1x8xf32, #tpu.memory_space<vmem>>, vector<1x8xf32>
      %33 = arith.mulf %32, %25 : vector<1x8xf32>
      %34 = vector.shape_cast %33 : vector<1x8xf32> to vector<1x1x8xf32>
      %cst_23 = arith.constant dense<0.000000e+00> : vector<1xf32>
      %35 = vector.multi_reduction <add>, %34, %cst_23 [1, 2] : vector<1x1x8xf32> to vector<1xf32>
      %36 = vector.shape_cast %35 : vector<1xf32> to vector<1x1x1xf32>
      %37 = vector.extract %36[0, 0, 0] : f32 from vector<1x1x1xf32>
      %cst_24 = arith.constant 0.000000e+00 : f32
      %38 = arith.subf %cst_24, %31 : f32
      %39 = arith.divf %38, %37 : f32
      %c0_25 = arith.constant 0 : index
      %c0_26 = arith.constant 0 : index
      %40 = memref.load %arg4[%c0_25, %c0_26] : memref<1x1xf32, #tpu.memory_space<smem>>
      memref.store %39, %arg4[%c0_25, %c0_26] : memref<1x1xf32, #tpu.memory_space<smem>>
    } else {
    }
    return
  }
  func.func @transform_0(%arg0: i32) -> (i32, i32) {
    %c0_i32 = arith.constant 0 : i32
    %c0_i32_0 = arith.constant 0 : i32
    return %arg0, %c0_i32 : i32, i32
  }
  func.func @transform_1(%arg0: i32) -> (i32, i32) {
    %c0_i32 = arith.constant 0 : i32
    %c0_i32_0 = arith.constant 0 : i32
    return %arg0, %c0_i32 : i32, i32
  }
  func.func @transform_2(%arg0: i32) -> (i32, i32) {
    %c0_i32 = arith.constant 0 : i32
    %c0_i32_0 = arith.constant 0 : i32
    %c0_i32_1 = arith.constant 0 : i32
    return %c0_i32, %c0_i32_0 : i32, i32
  }
  func.func @transform_3(%arg0: i32) -> (i32, i32) {
    %c0_i32 = arith.constant 0 : i32
    %c0_i32_0 = arith.constant 0 : i32
    %c0_i32_1 = arith.constant 0 : i32
    return %c0_i32, %c0_i32_0 : i32, i32
  }
}

</mosaic_0001>

<bundles_post_ra>
// kernel: tpu_custom_call.1
= control target key start
LH: loop header
LB: loop body
LE: loop exit
PB: predicated region body
PF: predicated region fallthrough
CT: control target
= control target key end

     0   :  { %v171_v2 = vmov 0   ;;  %s247_s0 = inlined_call_operand.vmem [shape: f32[32,8], index: 0, kind: input, shape index: {}]   ;;  %s248_s1 = inlined_call_operand.vmem [shape: s32[32,1], index: 1, kind: input, shape index: {}]   ;;  %s249_s2 = inlined_call_operand.vmem [shape: f32[1,8], index: 2, kind: input, shape index: {}]   ;;  %s250_s3 = inlined_call_operand.hbm [shape: f32[1,1], index: 3, kind: output, shape index: {}]  }
   0x1   :  { %v28_v0 = vld [vmem:[%s248_s1 + $0x10] sm:$0xff]  ;;  %v26_v1 = vld [vmem:[%s248_s1] sm:$0xff]  ;;  %156 = vset.pattern.permute.xlu1 %v171_v2  ;;  %155 = vset.pattern.permute.xlu0 %v171_v2 }
   0x2   :  { %8 = vsyncpa [#allocation5], 0  ;;  %39 = vperm.xlu1 %156, %v28_v0   ;;  %33 = vperm.xlu0 %155, %v26_v1   ;;  %v29_v3 = vld [vmem:[%s248_s1 + $0x18] sm:$0xff]  ;;  %v27_v4 = vld [vmem:[%s248_s1 + $0x8] sm:$0xff]  ;;  %vm19_vm0 = vcmask 57344   ;;  %v172_v5 = vmov 0.0   ;;  %v30_v6 = vlaneseq }
   0x3   :  { %21 = vst.msk [vmem:[#allocation3] sm:$0x1] %vm19_vm0, %v172_v5  ;;  %20 = vst.msk [vmem:[#allocation2] sm:$0x1] %vm19_vm0, %v172_v5  ;;  %v22_v10 = vld [vmem:[%s247_s0] sm:$0xff]  ;;  %v24_v11 = vld [vmem:[%s247_s0 + $0x10] sm:$0xff] }
   0x4   :  { %v31_v7 = vand.u32 127, %v30_v6  ;;  %v23_v12 = vld [vmem:[%s247_s0 + $0x8] sm:$0xff]  ;;  %vm53_vm3 = vcmask 64512   ;;  %v25_v17 = vld [vmem:[%s247_s0 + $0x18] sm:$0xff]  ;;  %v97_v54 = vld [vmem:[%s249_s2] sm:$0x1] }
   0x5   :  { %s159_s7 = scalar_lea.hbm %s250_s3, 16 }
   0x6   :  { %42 = vperm.xlu1 %156, %v29_v3   ;;  %36 = vperm.xlu0 %155, %v27_v4   ;;  %p160_p0 = scmp.ne.s32.totalorder %s250_s3, %s159_s7  ;;  %p163_p1 = scmp.lt.u32.totalorder %s159_s7, %s250_s3 }
   0x8   :  { %p165_p2 = pnand %p163_p1, %p160_p0 }
   0xa   :  { %v70_v48 = vld [vmem:[#allocation3] sm:$0x1]  ;;  %v52_v49 = vld [vmem:[#allocation2] sm:$0x1] }
  0x81   :  { %v40_v8 = vpop.permute.xlu1 %39  ;;  %v34_v9 = vpop.permute.xlu0 %33 }
  0x82   :  { %vm44_vm1 = vcmp.eq.s32.totalorder %v31_v7, %v34_v9  ;;  %vm46_vm2 = vcmp.eq.s32.totalorder %v31_v7, %v40_v8 }
  0x83   :  { %v48_v13 = vsel %vm44_vm1, %v22_v10, 0.0  ;;  %v142_v14 = vsel %vm44_vm1, 1.0, %v172_v5  ;;  %v50_v18 = vsel %vm46_vm2, %v24_v11, 0.0  ;;  %v144_v19 = vsel %vm46_vm2, 1.0, %v172_v5 }
  0x84   :  { %v54_v22 = vsel %vm53_vm3, %v48_v13, 0.0  ;;  %v79_v23 = vsel %vm53_vm3, %v142_v14, 0.0  ;;  %v57_v30 = vsel %vm53_vm3, %v50_v18, 0.0  ;;  %v82_v31 = vsel %vm53_vm3, %v144_v19, 0.0 }
  0x85   :  { %v43_v15 = vpop.permute.xlu1 %42  ;;  %v37_v16 = vpop.permute.xlu0 %36 }
  0x86   :  { %vm47_vm4 = vcmp.eq.s32.totalorder %v31_v7, %v43_v15  ;;  %vm45_vm5 = vcmp.eq.s32.totalorder %v31_v7, %v37_v16 }
  0x87   :  { %v49_v20 = vsel %vm45_vm5, %v23_v12, 0.0  ;;  %v143_v21 = vsel %vm45_vm5, 1.0, %v172_v5  ;;  %v51_v26 = vsel %vm47_vm4, %v25_v17, 0.0  ;;  %v145_v27 = vsel %vm47_vm4, 1.0, %v172_v5 }
  0x88   :  { %v55_v24 = vsel %vm53_vm3, %v49_v20, 0.0  ;;  %v80_v25 = vsel %vm53_vm3, %v143_v21, 0.0  ;;  %v59_v34 = vsel %vm53_vm3, %v51_v26, 0.0  ;;  %v84_v35 = vsel %vm53_vm3, %v145_v27, 0.0 }
  0x89   :  { %v56_v28 = vadd.f32 %v55_v24, %v54_v22  ;;  %v81_v29 = vadd.f32 %v80_v25, %v79_v23 }
  0x8b   :  { %v58_v32 = vadd.f32 %v57_v30, %v56_v28  ;;  %v83_v33 = vadd.f32 %v82_v31, %v81_v29 }
  0x8d   :  { %v60_v36 = vadd.f32 %v59_v34, %v58_v32  ;;  %v85_v37 = vadd.f32 %v84_v35, %v83_v33 }
  0x8f   :  { %v61_v38 = vrot.slane %v60_v36, 4  ;;  %v86_v39 = vrot.slane %v85_v37, 4 }
  0x91   :  { %v62_v40 = vadd.f32 %v61_v38, %v60_v36  ;;  %v87_v41 = vadd.f32 %v86_v39, %v85_v37 }
  0x93   :  { %v63_v42 = vrot.slane %v62_v40, 2  ;;  %v88_v43 = vrot.slane %v87_v41, 2 }
  0x95   :  { %v64_v44 = vadd.f32 %v63_v42, %v62_v40  ;;  %v89_v45 = vadd.f32 %v88_v43, %v87_v41 }
  0x97   :  { %v65_v46 = vrot.slane %v64_v44, 1  ;;  %v90_v47 = vrot.slane %v89_v45, 1 }
  0x99   :  { %v66_v50 = vadd.f32 %v65_v46, %v64_v44  ;;  %v91_v51 = vadd.f32 %v90_v47, %v89_v45 }
  0x9b   :  { %v92_v52 = vadd.f32 %v91_v51, %v70_v48  ;;  %v67_v53 = vadd.f32 %v66_v50, %v52_v49 }
  0x9d   :  { %93 = vst.msk [vmem:[#allocation3] sm:$0x1] %vm19_vm0, %v92_v52  ;;  %69 = vst.msk [vmem:[#allocation2] sm:$0x1] %vm19_vm0, %v67_v53 }
  0xa4   :  { %v110_v55 = vld [vmem:[#allocation3] sm:$0x1]  ;;  %v98_v56 = vld [vmem:[#allocation2] sm:$0x1] }
  0xa5   :  { %v111_v57 = vmul.f32 %v110_v55, %v97_v54  ;;  %v99_v58 = vmul.f32 %v98_v56, %v97_v54 }
  0xa7   :  { %v112_v59 = vsel %vm19_vm0, %v111_v57, 0.0  ;;  %v100_v60 = vsel %vm19_vm0, %v99_v58, 0.0 }
  0xa8   :  { %113 = vadd.xlane.f32.xlu1 %v112_v59  ;;  %101 = vadd.xlane.f32.xlu0 %v100_v60 }
 0x135   :  { %v114_v61 = vpop.xlane.xlu1 %113  ;;  %v102_v62 = vpop.xlane.xlu0 %101 }
 0x136   :  { %v115_v63 = vrot.slane %v114_v61, 4  ;;  %v103_v0 = vrot.slane %v102_v62, 4 }
 0x138   :  { %v116_v1 = vadd.f32 %v115_v63, %v114_v61  ;;  %v104_v2 = vadd.f32 %v103_v0, %v102_v62 }
 0x13a   :  { %v117_v3 = vrot.slane %v116_v1, 2  ;;  %v105_v4 = vrot.slane %v104_v2, 2 }
 0x13c   :  { %v118_v5 = vadd.f32 %v117_v3, %v116_v1  ;;  %v106_v6 = vadd.f32 %v105_v4, %v104_v2 }
 0x13e   :  { %v107_v7 = vrot.slane %v106_v6, 1  ;;  %v119_v8 = vrot.slane %v118_v5, 1 }
 0x140   :  { %v108_v9 = vadd.f32 %v107_v7, %v106_v6  ;;  %v120_v10 = vadd.f32 %v119_v8, %v118_v5 }
 0x142   :  { %146 = vpush %v108_v9 }
 0x143   :  { %148 = vpush %v120_v10 }
 0x173   :  { %s147_s2 = spop %146 }
 0x174   :  { %s149_s28 = spop %148  ;;  %s122_s29 = ssub.f32 0.0, %s147_s2 }
 0x175   :  { %v123_v11 = vstv %s149_s28 }
 0x176   :  { %157 = vrcp.f32 %v123_v11 }
 0x180   :  { %v158_v12 = vpop.eup %157 }
 0x181   :  { %150 = vpush %v158_v12 }
 0x1b2   :  { %s151_s30 = spop %150 }
 0x1b3   :  { %s126_s4 = smul.f32 %s151_s30, %s122_s29 }
 0x1b5   :  { %128 = sst [smem:[#allocation4]] %s126_s4 }
 0x1b6   :  { %168 = shalt.err (!%p165_p2)
}
 0x1b7   :  { %s173_s12 = smov [#allocation4]  }
 0x1b8   :  { %136 = dma.smem_to_hbm %s173_s12, 16, %s250_s3, [#allocation5]  }
 0x1b9   :  { %169 = dma.done.wait [#allocation5], 16  }
 0x1ba   :  { %170 = vsyncadd [#allocation5], 4294967280 }
 0x1bb   :  { %140 = sfence }
 0x1bc   :  { %141 = vsyncpa [#allocation5], 1 }

</bundles_post_ra>
